<compile_context>
chip_gen: v6e
topology: v6e:2x2x1
jax: 0.10.0
libtpu: 0.0.40
codegen_flags: <defaults>
</compile_context>

<pallas_src>
import jax
import jax.numpy as jnp
from jax.experimental import pallas as pl
from jax.experimental.pallas import tpu as pltpu


def _round_up(x, m):
    return ((x + m - 1) // m) * m


def _fused_mlp_kernel(x_ref, w1_ref, b1_ref, w2_ref, b2_ref, feat2_ref, y_ref):
    """Fused 2-layer readout MLP tile.

    x_ref is f32 (cast to bf16 in-vreg for the MXU); w1/w2 are bf16; biases
    and y are f32.  feat2 (= cat(SiLU(x@W1+b1), ones)) is written directly in
    bf16, so the Linear2 input never round-trips HBM in f32 and the hook
    feature needs no wrapper-side concat.
    """
    f_hid = feat2_ref.shape[-1] - 1
    rows = x_ref.shape[0]

    # ---- Linear 1 (MXU, bf16 operands, f32 accumulate) ----------------------
    x_bf = x_ref[...].astype(jnp.bfloat16)          # in-vreg cast (VPU, free)
    h = jnp.dot(x_bf, w1_ref[...], preferred_element_type=jnp.float32)
    h = h + b1_ref[...]                             # f32 bias add (VPU)
    a1 = h * jax.nn.sigmoid(h)                      # SiLU in f32 (EUP + VPU)

    # ---- feat2 = cat(a1, ones) written in-kernel, bf16 ----------------------
    feat2_ref[:, 0:f_hid] = a1.astype(feat2_ref.dtype)
    feat2_ref[:, f_hid:f_hid + 1] = jnp.ones((rows, 1), feat2_ref.dtype)

    # ---- Linear 2 (MXU, bf16 operands, f32 accumulate) ----------------------
    y = jnp.dot(a1.astype(jnp.bfloat16), w2_ref[...],
                preferred_element_type=jnp.float32)
    y_ref[...] = (y + b2_ref[...]).astype(y_ref.dtype)


def _tpu_vmem_and_kind():
    """Physical VMEM capacity (bytes) and device-kind string, with fallbacks."""
    vmem = 64 << 20
    try:
        vmem = int(pltpu.get_tpu_info().vmem_capacity_bytes)
    except Exception:
        pass
    kind = ""
    try:
        kind = str(jax.devices()[0].device_kind)
    except Exception:
        pass
    return vmem, kind


def feature_extractor_forward(x, params, *, max_tile_n=4096):
    """Equivalent of FeatureExtractor.forward for a 2-layer readout MLP.

    Returns (features, grads_reversed, y).  Backward-hook gradients require a
    backward pass, so after forward() alone the grads list is empty (matches
    the PyTorch module's semantics).
    """
    (w1, b1), (w2, b2) = params
    n, f_in = x.shape
    f_hid = w1.shape[1]
    f_out = w2.shape[1]

    # MXU operands in bf16; biases stay f32 (v5e-safe VPU path).
    w1_bf = w1.astype(jnp.bfloat16)
    w2_bf = w2.astype(jnp.bfloat16)
    b1f = b1.reshape(1, f_hid).astype(jnp.float32)
    b2f = b2.reshape(1, f_out).astype(jnp.float32)

    # ---- Derive the row tile from the per-chip VMEM budget ------------------
    vmem_cap, kind = _tpu_vmem_and_kind()
    budget = int(vmem_cap * 3 // 4)                       # leave compiler headroom
    # double-buffered per-row bytes: x(f32) + feat2(bf16) + y(f32)
    bytes_per_row = f_in * 4 + (f_hid + 1) * 2 + f_out * 4
    # weights are double-buffered by the default pipeline (constant index_map)
    weight_bytes = (f_in * f_hid + f_hid * f_out) * 2 + (f_hid + f_out) * 4
    avail = max(budget - 2 * weight_bytes - (2 << 20), 1 << 20)
    tile_from_budget = max(8, (avail // (2 * bytes_per_row)) // 8 * 8)
    tile_n = int(min(max_tile_n, tile_from_budget, _round_up(n, 8)))

    n_pad = pl.cdiv(n, tile_n) * tile_n
    xp = jnp.pad(x, ((0, n_pad - n), (0, 0))) if n_pad != n else x
    grid = (n_pad // tile_n,)

    vmem_needed = 2 * tile_n * bytes_per_row + 2 * weight_bytes + (2 << 20)
    vmem_limit = int(min(max(vmem_needed, 16 << 20), vmem_cap))

    # Honest traffic estimate (post layout/dtype fixes).
    cost = pl.CostEstimate(
        flops=2 * n_pad * f_in * f_hid + 2 * n_pad * f_hid * f_out,
        transcendentals=n_pad * f_hid,
        bytes_accessed=(n_pad * f_in * 4            # x read (f32)
                        + weight_bytes              # resident weights
                        + n_pad * (f_hid + 1) * 2   # feat2 write (bf16)
                        + n_pad * f_out * 4),       # y write (f32, narrow)
    )

    # v7x: shard the row grid across its 2 TensorCores.
    is_v7 = "v7" in kind.lower()
    dim_sem = ((getattr(pltpu, "CORE_PARALLEL", "parallel"),)
               if is_v7 else ("parallel",))

    feat2_full, y_full = pl.pallas_call(
        _fused_mlp_kernel,
        out_shape=(
            jax.ShapeDtypeStruct((n_pad, f_hid + 1), jnp.bfloat16),  # feat2 (hook-2)
            jax.ShapeDtypeStruct((n_pad, f_out), jnp.float32),       # y (narrow)
        ),
        grid_spec=pltpu.PrefetchScalarGridSpec(
            num_scalar_prefetch=0,
            grid=grid,
            in_specs=[
                pl.BlockSpec((tile_n, f_in), lambda i: (i, 0)),     # x tile (f32)
                pl.BlockSpec((f_in, f_hid), lambda i: (0, 0)),      # W1 (resident)
                pl.BlockSpec((1, f_hid), lambda i: (0, 0)),         # b1 (resident)
                pl.BlockSpec((f_hid, f_out), lambda i: (0, 0)),     # W2 (resident)
                pl.BlockSpec((1, f_out), lambda i: (0, 0)),         # b2 (resident)
            ],
            out_specs=(
                pl.BlockSpec((tile_n, f_hid + 1), lambda i: (i, 0)),
                pl.BlockSpec((tile_n, f_out), lambda i: (i, 0)),
            ),
        ),
        compiler_params=pltpu.CompilerParams(
            dimension_semantics=dim_sem,
            vmem_limit_bytes=vmem_limit,
        ),
        cost_estimate=cost,
    )(xp, w1_bf, b1f, w2_bf, b2f)

    feat2 = feat2_full[:n]      # bf16, already cat(a1, ones); no extra concat pass
    y = y_full[:n]

    # forward-pre-hook feature for Linear1: cat(x, ones) — a pure copy of an
    # existing HBM array; done in the wrapper where XLA fuses/aliases it.
    feat1 = jnp.concatenate([x, jnp.ones((n, 1), x.dtype)], axis=-1)
    features = [feat1, feat2]

    grads = []  # TODO(synk): backward-hook gradients need a backward pass; not part of forward semantics.
    return features, grads[::-1], y


def init_params(key, f_in, f_hidden, f_out):
    k1, k2, k3, k4 = jax.random.split(key, 4)
    w1 = jax.random.normal(k1, (f_in, f_hidden), jnp.float32) * 0.1
    b1 = jax.random.normal(k2, (1, f_hidden), jnp.float32) * 0.01
    w2 = jax.random.normal(k3, (f_hidden, f_out), jnp.float32) * 0.1
    b2 = jax.random.normal(k4, (1, f_out), jnp.float32) * 0.01
    return (w1, b1), (w2, b2)


if __name__ == "__main__":
    N, F_IN, F_HID, F_OUT = 8, 32, 16, 1

    key = jax.random.PRNGKey(0)
    kx, kp = jax.random.split(key)
    x = jax.random.normal(kx, (N, F_IN), jnp.float32)
    params = init_params(kp, F_IN, F_HID, F_OUT)

    features, grads, y = feature_extractor_forward(x, params)
    jax.block_until_ready(features)
    jax.block_until_ready(y)

    # Reference in plain JAX (f32).  bf16 MXU operands / bf16 feat2 storage
    # => loosened tolerance on the computed paths; feat1 is an exact copy.
    (w1, b1), (w2, b2) = params
    h = x @ w1 + b1
    a1_ref = h * jax.nn.sigmoid(h)
    y_ref = a1_ref @ w2 + b2
    feat1_ref = jnp.concatenate([x, jnp.ones((N, 1), x.dtype)], axis=-1)
    feat2_ref = jnp.concatenate([a1_ref, jnp.ones((N, 1), x.dtype)], axis=-1)

    assert len(features) == 2 and len(grads) == 0
    assert features[0].shape == (N, F_IN + 1)
    assert features[1].shape == (N, F_HID + 1)
    assert y.shape == (N, F_OUT)
    assert jnp.allclose(features[0], feat1_ref, atol=1e-6)          # exact copy path
    assert jnp.allclose(features[1].astype(jnp.float32), feat2_ref,
                        atol=2e-2, rtol=2e-2)
    assert jnp.allclose(y, y_ref, atol=2e-2, rtol=2e-2)

    print("KERNEL_OK")
</pallas_src>

<mosaic_0001>
module attributes {stable_mosaic.version = 11 : i64} {
  func.func @_fused_mlp_kernel(%arg0: i32, %arg1: memref<8x32xf32, #tpu.memory_space<vmem>>, %arg2: memref<32x16xbf16, #tpu.memory_space<vmem>>, %arg3: memref<1x16xf32, #tpu.memory_space<vmem>>, %arg4: memref<16x1xbf16, #tpu.memory_space<vmem>>, %arg5: memref<1x1xf32, #tpu.memory_space<vmem>>, %arg6: memref<8x17xbf16, #tpu.memory_space<vmem>>, %arg7: memref<8x1xf32, #tpu.memory_space<vmem>>) attributes {dimension_semantics = [#tpu.dimension_semantics<parallel>], iteration_bounds = array<i64: 1>, scalar_prefetch = 0 : i64, scratch_operands = 0 : i64, tpu.core_type = #tpu.core_type<tc>, window_params = [{transform_indices = @transform_0, window_bounds = array<i64: 8, 32>}, {pipeline_mode = #tpu.pipeline_mode<synchronous>, transform_indices = @transform_1, window_bounds = array<i64: 32, 16>}, {pipeline_mode = #tpu.pipeline_mode<synchronous>, transform_indices = @transform_2, window_bounds = array<i64: 1, 16>}, {pipeline_mode = #tpu.pipeline_mode<synchronous>, transform_indices = @transform_3, window_bounds = array<i64: 16, 1>}, {pipeline_mode = #tpu.pipeline_mode<synchronous>, transform_indices = @transform_4, window_bounds = array<i64: 1, 1>}, {transform_indices = @transform_5, window_bounds = array<i64: 8, 17>}, {transform_indices = @transform_6, window_bounds = array<i64: 8, 1>}]} {
    %c0 = arith.constant 0 : index
    %c0_0 = arith.constant 0 : index
    %0 = vector.load %arg1[%c0, %c0_0] : memref<8x32xf32, #tpu.memory_space<vmem>>, vector<8x32xf32>
    %1 = arith.truncf %0 : vector<8x32xf32> to vector<8x32xbf16>
    %c0_1 = arith.constant 0 : index
    %c0_2 = arith.constant 0 : index
    %2 = vector.load %arg2[%c0_1, %c0_2] : memref<32x16xbf16, #tpu.memory_space<vmem>>, vector<32x16xbf16>
    %cst = arith.constant dense<0.000000e+00> : vector<8x16xf32>
    %3 = tpu.matmul %1, %2, %cst {dimension_numbers = #tpu.dot_dimension_numbers<[1], [0], [0], [1], [0, 0, 1, 1], [], []>} : vector<8x32xbf16>, vector<32x16xbf16>, vector<8x16xf32> -> vector<8x16xf32>
    %c0_3 = arith.constant 0 : index
    %c0_4 = arith.constant 0 : index
    %4 = vector.load %arg3[%c0_3, %c0_4] : memref<1x16xf32, #tpu.memory_space<vmem>>, vector<1x16xf32>
    %5 = vector.broadcast %4 : vector<1x16xf32> to vector<8x16xf32>
    %6 = arith.addf %3, %5 : vector<8x16xf32>
    %7 = arith.negf %6 : vector<8x16xf32>
    %8 = math.exp %7 : vector<8x16xf32>
    %cst_5 = arith.constant 1.000000e+00 : f32
    %9 = vector.broadcast %cst_5 : f32 to vector<8x16xf32>
    %10 = arith.addf %9, %8 : vector<8x16xf32>
    %11 = arith.divf %9, %10 : vector<8x16xf32>
    %12 = arith.mulf %6, %11 : vector<8x16xf32>
    %13 = arith.truncf %12 : vector<8x16xf32> to vector<8x16xbf16>
    %c0_6 = arith.constant 0 : index
    %c0_7 = arith.constant 0 : index
    %14 = vector.load %arg6[%c0_6, %c0_7] : memref<8x17xbf16, #tpu.memory_space<vmem>>, vector<8x16xbf16>
    tpu.vector_store %arg6[%c0_6, %c0_7], %13 {strides = array<i32>} : memref<8x17xbf16, #tpu.memory_space<vmem>>, vector<8x16xbf16>,
    %cst_8 = arith.constant 1.000000e+00 : bf16
    %15 = vector.broadcast %cst_8 : bf16 to vector<8x1xbf16>
    %c0_9 = arith.constant 0 : index
    %c16 = arith.constant 16 : index
    %16 = vector.load %arg6[%c0_9, %c16] : memref<8x17xbf16, #tpu.memory_space<vmem>>, vector<8x1xbf16>
    tpu.vector_store %arg6[%c0_9, %c16], %15 {strides = array<i32>} : memref<8x17xbf16, #tpu.memory_space<vmem>>, vector<8x1xbf16>,
    %17 = arith.truncf %12 : vector<8x16xf32> to vector<8x16xbf16>
    %c0_10 = arith.constant 0 : index
    %c0_11 = arith.constant 0 : index
    %18 = vector.load %arg4[%c0_10, %c0_11] : memref<16x1xbf16, #tpu.memory_space<vmem>>, vector<16x1xbf16>
    %cst_12 = arith.constant dense<0.000000e+00> : vector<8x1xf32>
    %19 = tpu.matmul %17, %18, %cst_12 {dimension_numbers = #tpu.dot_dimension_numbers<[1], [0], [0], [1], [0, 0, 1, 1], [], []>} : vector<8x16xbf16>, vector<16x1xbf16>, vector<8x1xf32> -> vector<8x1xf32>
    %c0_13 = arith.constant 0 : index
    %c0_14 = arith.constant 0 : index
    %20 = vector.load %arg5[%c0_13, %c0_14] : memref<1x1xf32, #tpu.memory_space<vmem>>, vector<1x1xf32>
    %21 = vector.broadcast %20 : vector<1x1xf32> to vector<8x1xf32>
    %22 = arith.addf %19, %21 : vector<8x1xf32>
    %c0_15 = arith.constant 0 : index
    %c0_16 = arith.constant 0 : index
    %23 = vector.load %arg7[%c0_15, %c0_16] : memref<8x1xf32, #tpu.memory_space<vmem>>, vector<8x1xf32>
    tpu.vector_store %arg7[%c0_15, %c0_16], %22 {strides = array<i32>} : memref<8x1xf32, #tpu.memory_space<vmem>>, vector<8x1xf32>,
    return
  }
  func.func @transform_0(%arg0: i32) -> (i32, i32) {
    %c0_i32 = arith.constant 0 : i32
    %c0_i32_0 = arith.constant 0 : i32
    return %arg0, %c0_i32 : i32, i32
  }
  func.func @transform_1(%arg0: i32) -> (i32, i32) {
    %c0_i32 = arith.constant 0 : i32
    %c0_i32_0 = arith.constant 0 : i32
    %c0_i32_1 = arith.constant 0 : i32
    return %c0_i32, %c0_i32_0 : i32, i32
  }
  func.func @transform_2(%arg0: i32) -> (i32, i32) {
    %c0_i32 = arith.constant 0 : i32
    %c0_i32_0 = arith.constant 0 : i32
    %c0_i32_1 = arith.constant 0 : i32
    return %c0_i32, %c0_i32_0 : i32, i32
  }
  func.func @transform_3(%arg0: i32) -> (i32, i32) {
    %c0_i32 = arith.constant 0 : i32
    %c0_i32_0 = arith.constant 0 : i32
    %c0_i32_1 = arith.constant 0 : i32
    return %c0_i32, %c0_i32_0 : i32, i32
  }
  func.func @transform_4(%arg0: i32) -> (i32, i32) {
    %c0_i32 = arith.constant 0 : i32
    %c0_i32_0 = arith.constant 0 : i32
    %c0_i32_1 = arith.constant 0 : i32
    return %c0_i32, %c0_i32_0 : i32, i32
  }
  func.func @transform_5(%arg0: i32) -> (i32, i32) {
    %c0_i32 = arith.constant 0 : i32
    %c0_i32_0 = arith.constant 0 : i32
    return %arg0, %c0_i32 : i32, i32
  }
  func.func @transform_6(%arg0: i32) -> (i32, i32) {
    %c0_i32 = arith.constant 0 : i32
    %c0_i32_0 = arith.constant 0 : i32
    return %arg0, %c0_i32 : i32, i32
  }
}

</mosaic_0001>

<bundles_post_ra>
// kernel: tpu_custom_call.1
= control target key start
LH: loop header
LB: loop body
LE: loop exit
PB: predicated region body
PF: predicated region fallthrough
CT: control target
= control target key end

     0   :  { %s310_s0 = inlined_call_operand.vmem [shape: f32[8,32], index: 0, kind: input, shape index: {}]   ;;  %s311_s1 = inlined_call_operand.vmem [shape: bf16[32,16], index: 1, kind: input, shape index: {}]   ;;  %s312_s2 = inlined_call_operand.vmem [shape: f32[1,16], index: 2, kind: input, shape index: {}]   ;;  %s313_s3 = inlined_call_operand.vmem [shape: bf16[16,1], index: 3, kind: input, shape index: {}]   ;;  %s314_s4 = inlined_call_operand.<no memory space> [shape: f32[1,1], index: 4, kind: input, shape index: {}]   ;;  %s315_s5 = inlined_call_operand.hbm [shape: bf16[8,17], index: 5, kind: output, shape index: {0}]   ;;  %s316_s6 = inlined_call_operand.vmem [shape: f32[8,1], index: 6, kind: output, shape index: {1}]  }
   0x1   :  { %v12_v0 = vstv %s314_s4 }
   0x2   :  { %13 = vst [vmem:[#allocation2] sm:$0x1] %v12_v0 }
   0x3   :  { %v218_v1 = vld [vmem:[%s311_s1 + $0x8] sm:$0xff]   ;;  %v247_v2 = vmov 0.0   ;;  %v219_v3 = vld [vmem:[%s311_s1] sm:$0xff]   ;;  %vm248_vm0 = vmmov 0  }
   0x4   :  { %200 = vmatprep.subr.bf16.mxu0 %v247_v2  ;;  %208 = vmatprep.subr.bf16.mxu1 %v247_v2  ;;  %v27_v4 = vld [vmem:[%s310_s0] sm:$0xff] }
   0x5   :  { %201 = vmatpush3.bf16.msra.mxu0 %v218_v1  ;;  %204 = vmatprep.mubr.msk.bf16.mxu0 %vm248_vm0, %v247_v2 }
   0x6   :  { %202 = vmatprep.subr.bf16.mxu0 %v247_v2  ;;  %210 = vmatprep.mubr.msk.bf16.mxu1 %vm248_vm0, %v247_v2 }
   0x7   :  { %14 = vsyncpa [#allocation4], 0  ;;  %v28_v5 = vpack.c.bf16 %v27_v4, %v27_v4  ;;  %vm52_vm1 = vcmask 261120   ;;  %v220_v6 = vld [vmem:[%s313_s3] sm:$0xff]   ;;  %vm123_vm2 = vcmask 130048   ;;  %vm104_vm3 = vcmask 125952  }
   0x8   :  { %209 = vmatpush3.bf16.msra.mxu1 %v220_v6  ;;  %v187_v7 = vld [vmem:[%s312_s2] ss:$0 sm:$0xff]  ;;  %vm106_vm4 = vcmask 134272   ;;  %s249_s0 = smov [#allocation3]   ;;  %v250_v19 = vmov 1065369472  }
   0x9   :  { %203 = vmatpush3.bf16.msra.mxu0 %v219_v3  ;;  %s175_s2 = sshll.u32 %s249_s0, 4  ;;  %s176_s2 = int_to_ptr.vmem [resolvable:$true] %s175_s2 }
   0xa   :  { %s225_s3 = scalar_lea.vmem %s176_s2, 64  ;;  %p230_p1 = scmp.lt.s32.totalorder %s176_s2, %s176_s2 }
   0xb   :  { %p226_p0 = scmp.ne.s32.totalorder %s176_s2, %s225_s3  ;;  %p231_p2 = scmp.lt.s32.totalorder %s225_s3, %s225_s3 }
   0xc   :  { %205 = vmatmul.mubr.msk.bf16.vlgmr.msra.gmra.mxu0 %vm52_vm1, %v28_v5 }
   0xd   :  { %p232_p3 = por %p231_p2, %p230_p1 }
   0xf   :  { %p233_p4 = pnand %p232_p3, %p226_p0 }
  0xcc   :  { %v90_v8 = vpop.f32.mrf.mxu0 }
  0xcd   :  { %v91_v9 = vadd.f32 %v187_v7, %v90_v8 }
  0xce   :  { %v206_v10 = vpop.f32.mrf.mxu0 }
  0xcf   :  { %v191_v11 = vmul.f32 -1.442695, %v91_v9 }
  0xd0   :  { %v93_v12 = vpop.f32.mrf.mxu0 }
  0xd1   :  { %221 = vpow2.f32 %v191_v11 }
  0xd2   :  { %v207_v13 = vpop.f32.mrf.mxu0 }
  0xde   :  { %v222_v14 = vpop.eup %221 }
  0xdf   :  { %v99_v15 = vadd.f32 1.0, %v222_v14 }
  0xe1   :  { %223 = vrcp.f32 %v99_v15 }
  0xee   :  { %v224_v16 = vpop.eup %223 }
  0xef   :  { %v102_v17 = vmul.f32 %v224_v16, %v91_v9 }
  0xf1   :  { %v103_v18 = vpack.c.bf16 %v102_v17, %v102_v17 }
  0xf3   :  { %211 = vmatmul.mubr.msk.bf16.vlgmr.msra.gmra.mxu1 %vm123_vm2, %v103_v18  ;;  %105 = vst.msk [vmem:[#allocation3] sm:$0xf] %vm104_vm3, %v103_v18 }
  0xf4   :  { %107 = vst.msk [vmem:[#allocation3] sm:$0xf] %vm106_vm4, %v250_v19 }
  0xf5   :  { %236 = shalt.err (!%p233_p4)
}
  0xf6   :  { %178 = dma.vmem_to_hbm [thread:$0]  %s176_s2, 64, %s315_s5, [#allocation4]   ;;  %v192_v20 = vld [vmem:[#allocation2] ss:$0 sm:$0xff]  ;;  %vm167_vm5 = vcmask 7168  }
 0x1b3   :  { %v161_v21 = vpop.f32.mrf.mxu1 }
 0x1b4   :  { %v162_v22 = vadd.f32 %v192_v20, %v161_v21 }
 0x1b5   :  { %v212_v23 = vpop.f32.mrf.mxu1 }
 0x1b6   :  { %168 = vst.msk [vmem:[%s316_s6] sm:$0xff] %vm167_vm5, %v162_v22 }
 0x1b7   :  { %v164_v24 = vpop.f32.mrf.mxu1 }
 0x1b9   :  { %v213_v25 = vpop.f32.mrf.mxu1 }
 0x1ba   :  { %245 = dma.done.wait [#allocation4], 64  }
 0x1bb   :  { %246 = vsyncadd [#allocation4], 4294967232 }
 0x1bc   :  { %186 = vsyncpa [#allocation4], 1 }

</bundles_post_ra>
